<compile_context>
chip_gen: v7x
topology: tpu7x:2x2x1
jax: 0.10.0
libtpu: 0.0.40
codegen_flags: <defaults>
</compile_context>

<pallas_src>
import functools

import jax
import jax.numpy as jnp
import numpy as np
from jax.experimental import pallas as pl
from jax.experimental.pallas import tpu as pltpu


def _select_config():
    """Generation-aware (tile, vmem_limit_bytes)."""
    tile, vmem = 128, 32 * 1024 * 1024          # safe default
    try:
        kind = jax.devices()[0].device_kind.lower()
    except Exception:
        return tile, vmem
    if "v7" in kind:
        return 256, 48 * 1024 * 1024            # 64 MiB physical/TC: leave headroom
    if "v6" in kind:
        return 256, 64 * 1024 * 1024            # 256-wide MXU, 128 MiB VMEM
    if "v5" in kind or "v4" in kind:
        return 128, 64 * 1024 * 1024            # 128-wide MXU, lowest HBM BW
    return tile, vmem


TILE, _VMEM_LIMIT = _select_config()            # node row tile == node column tile


# ----------------------------------------------------------------------------
# Kernels
# ----------------------------------------------------------------------------
def gat_lin_kernel(x_ref, w_ref, adst_ref, asrc_ref, h_ref, ad_ref, as_ref):
    """h = x @ W_gat; per-node attention logits <h, a_dst>, <h, a_src>."""
    h = jnp.dot(x_ref[...], w_ref[...], preferred_element_type=jnp.float32)
    h_ref[...] = h.astype(h_ref.dtype)
    ad_ref[...] = jnp.sum(h * adst_ref[...], axis=-1, keepdims=True)
    as_ref[...] = jnp.sum(h * asrc_ref[...], axis=-1, keepdims=True)


def gat_attn_kernel(kbeg_ref, knum_ref, ad_ref, asr_ref, mask_ref, hk_ref,
                    b_ref, o_ref, m_sc, l_sc, acc_sc):
    """Flash-style masked GAT attention over block-diagonal column tiles.

    e[i,j] = LeakyReLU(0.2)(a_dst[i] + a_src[j]) over the leaf-edge neighbourhood
    (incl. self loops); online softmax; out = relu(attn @ h + bias).
    """
    i = pl.program_id(0)
    k = pl.program_id(1)

    @pl.when(k == 0)
    def _():
        m_sc[...] = jnp.full_like(m_sc, -1e30)   # finite init: robust when a whole
        l_sc[...] = jnp.zeros_like(l_sc)         # tile is masked for some rows
        acc_sc[...] = jnp.zeros_like(acc_sc)

    @pl.when(k < knum_ref[i])                    # skip off-range column tiles
    def _():
        e = ad_ref[...] + asr_ref[...]                        # (TM,1)+(1,TK)->(TM,TK)
        e = jnp.where(e > 0, e, 0.2 * e)                      # LeakyReLU(0.2)
        valid = mask_ref[...] != 0                            # int8 leaf-edge mask
        e = jnp.where(valid, e, -1e30)
        m_new = jnp.maximum(m_sc[...], jnp.max(e, axis=-1, keepdims=True))
        corr = jnp.exp(m_sc[...] - m_new)
        p = jnp.where(valid, jnp.exp(e - m_new), 0.0)
        l_sc[...] = corr * l_sc[...] + jnp.sum(p, axis=-1, keepdims=True)
        acc_sc[...] = corr * acc_sc[...] + jnp.dot(
            p.astype(jnp.bfloat16), hk_ref[...], preferred_element_type=jnp.float32)
        m_sc[...] = m_new

    @pl.when(k == pl.num_programs(1) - 1)
    def _():
        inv_l = pl.reciprocal(l_sc[...], approx=True)         # self loops => l > 0
        o_ref[...] = jnp.maximum(acc_sc[...] * inv_l + b_ref[...],
                                 0.0).astype(o_ref.dtype)


def hw_kernel(h_ref, w_ref, dinv_ref, o_ref):
    """HW = dinv * (H @ W): GCN feature transform done once per node tile
    (not once per (row, col) aggregation step)."""
    hw = jnp.dot(h_ref[...], w_ref[...], preferred_element_type=jnp.float32)
    o_ref[...] = (dinv_ref[...] * hw).astype(o_ref.dtype)


def gcn_agg_kernel(kbeg_ref, knum_ref, a_ref, hw_ref, dinv_ref, b_ref,
                   o_ref, acc_ref):
    """relu(dinv_row * ((A+I) @ HW) + b) over block-diagonal column tiles."""
    i = pl.program_id(0)
    k = pl.program_id(1)

    @pl.when(k == 0)
    def _():
        acc_ref[...] = jnp.zeros_like(acc_ref)

    @pl.when(k < knum_ref[i])                    # skip off-range column tiles
    def _():
        acc_ref[...] += jnp.dot(a_ref[...], hw_ref[...],
                                preferred_element_type=jnp.float32)

    @pl.when(k == pl.num_programs(1) - 1)
    def _():
        o_ref[...] = jnp.maximum(dinv_ref[...] * acc_ref[...] + b_ref[...],
                                 0.0).astype(o_ref.dtype)


def head_kernel(t_ref, x_ref, wlin_ref, blin_ref, wct_ref, wcs_ref, bcls_ref,
                out_ref, *, num_classes):
    """lin branch (relu), cls over concat([T, S]) as two matmuls, log_softmax."""
    s = jnp.dot(x_ref[...], wlin_ref[...],
                preferred_element_type=jnp.float32) + blin_ref[...]
    s = jnp.maximum(s, 0.0)
    logits = (jnp.dot(t_ref[...], wct_ref[...], preferred_element_type=jnp.float32)
              + jnp.dot(s.astype(jnp.bfloat16), wcs_ref[...],
                        preferred_element_type=jnp.float32)
              + bcls_ref[...])
    col = jax.lax.broadcasted_iota(jnp.int32, logits.shape, 1)
    logits = jnp.where(col < num_classes, logits, -1e30)      # mask padded classes
    z = logits - jnp.max(logits, axis=-1, keepdims=True)
    lse = jnp.log(jnp.sum(jnp.exp(z), axis=-1, keepdims=True))
    out_ref[...] = z - lse


# ----------------------------------------------------------------------------
# pallas_call wrappers
# ----------------------------------------------------------------------------
def _clamped_col(i, k, kbeg_ref, knum_ref):
    """Column-tile index clamped into this row tile's [kbeg, kbeg+knum) range
    (clamp => no DMA re-fetch on skipped steps)."""
    return kbeg_ref[i] + jnp.minimum(k, knum_ref[i] - 1)


def gat_conv(x_bf, w_gat_bf, a_dst, a_src, mask_i8, b_gat, kbeg, knum, kt_max):
    n, f = x_bf.shape
    cp1 = pltpu.CompilerParams(dimension_semantics=("parallel",),
                               vmem_limit_bytes=_VMEM_LIMIT)

    h_lin, a_d, a_s = pl.pallas_call(
        gat_lin_kernel,
        out_shape=(jax.ShapeDtypeStruct((n, f), jnp.bfloat16),
                   jax.ShapeDtypeStruct((n, 1), jnp.float32),
                   jax.ShapeDtypeStruct((n, 1), jnp.float32)),
        grid=(n // TILE,),
        in_specs=[pl.BlockSpec((TILE, f), lambda i: (i, 0)),
                  pl.BlockSpec((f, f), lambda i: (0, 0)),
                  pl.BlockSpec((1, f), lambda i: (0, 0)),
                  pl.BlockSpec((1, f), lambda i: (0, 0))],
        out_specs=(pl.BlockSpec((TILE, f), lambda i: (i, 0)),
                   pl.BlockSpec((TILE, 1), lambda i: (i, 0)),
                   pl.BlockSpec((TILE, 1), lambda i: (i, 0))),
        compiler_params=cp1,
    )(x_bf, w_gat_bf, a_dst, a_src)

    # (n,1)->(1,n) relayout of n scalars (negligible): gives the attention kernel
    # a lane-dense (1, TILE) a_src block with no in-kernel transpose.
    a_s_row = a_s.reshape(1, n)

    return pl.pallas_call(
        gat_attn_kernel,
        out_shape=jax.ShapeDtypeStruct((n, f), jnp.bfloat16),
        grid_spec=pltpu.PrefetchScalarGridSpec(
            num_scalar_prefetch=2,
            grid=(n // TILE, kt_max),
            in_specs=[
                pl.BlockSpec((TILE, 1), lambda i, k, kb, kn: (i, 0)),
                pl.BlockSpec((1, TILE),
                             lambda i, k, kb, kn: (0, _clamped_col(i, k, kb, kn))),
                pl.BlockSpec((TILE, TILE),
                             lambda i, k, kb, kn: (i, _clamped_col(i, k, kb, kn))),
                pl.BlockSpec((TILE, f),
                             lambda i, k, kb, kn: (_clamped_col(i, k, kb, kn), 0)),
                pl.BlockSpec((1, f), lambda i, k, kb, kn: (0, 0)),
            ],
            out_specs=pl.BlockSpec((TILE, f), lambda i, k, kb, kn: (i, 0)),
            scratch_shapes=[pltpu.VMEM((TILE, 1), jnp.float32),
                            pltpu.VMEM((TILE, 1), jnp.float32),
                            pltpu.VMEM((TILE, f), jnp.float32)]),
        compiler_params=pltpu.CompilerParams(
            dimension_semantics=("parallel", "arbitrary"),
            vmem_limit_bytes=_VMEM_LIMIT),
    )(kbeg, knum, a_d, a_s_row, mask_i8, h_lin, b_gat)


def gcn_conv(a01_bf, h_bf, w_bf, b, dinv, kbeg, knum, kt_max):
    n = a01_bf.shape[0]
    h_in, h_out = w_bf.shape

    hw = pl.pallas_call(
        hw_kernel,
        out_shape=jax.ShapeDtypeStruct((n, h_out), jnp.bfloat16),
        grid=(n // TILE,),
        in_specs=[pl.BlockSpec((TILE, h_in), lambda i: (i, 0)),
                  pl.BlockSpec((h_in, h_out), lambda i: (0, 0)),
                  pl.BlockSpec((TILE, 1), lambda i: (i, 0))],
        out_specs=pl.BlockSpec((TILE, h_out), lambda i: (i, 0)),
        compiler_params=pltpu.CompilerParams(
            dimension_semantics=("parallel",), vmem_limit_bytes=_VMEM_LIMIT),
    )(h_bf, w_bf, dinv)

    return pl.pallas_call(
        gcn_agg_kernel,
        out_shape=jax.ShapeDtypeStruct((n, h_out), jnp.bfloat16),
        grid_spec=pltpu.PrefetchScalarGridSpec(
            num_scalar_prefetch=2,
            grid=(n // TILE, kt_max),
            in_specs=[
                pl.BlockSpec((TILE, TILE),
                             lambda i, k, kb, kn: (i, _clamped_col(i, k, kb, kn))),
                pl.BlockSpec((TILE, h_out),
                             lambda i, k, kb, kn: (_clamped_col(i, k, kb, kn), 0)),
                pl.BlockSpec((TILE, 1), lambda i, k, kb, kn: (i, 0)),
                pl.BlockSpec((1, h_out), lambda i, k, kb, kn: (0, 0)),
            ],
            out_specs=pl.BlockSpec((TILE, h_out), lambda i, k, kb, kn: (i, 0)),
            scratch_shapes=[pltpu.VMEM((TILE, h_out), jnp.float32)]),
        compiler_params=pltpu.CompilerParams(
            dimension_semantics=("parallel", "arbitrary"),
            vmem_limit_bytes=_VMEM_LIMIT),
    )(kbeg, knum, a01_bf, hw, dinv, b)


def head(t_roots_bf, x_roots_bf, w_lin_bf, b_lin, w_ct_bf, w_cs_bf, b_cls,
         num_classes):
    g_pad = t_roots_bf.shape[0]
    c_pad = w_ct_bf.shape[1]
    kernel = functools.partial(head_kernel, num_classes=num_classes)
    # Tiny gathered (G_PAD x 128) operands: whole-array VMEM blocks, one step.
    return pl.pallas_call(
        kernel,
        out_shape=jax.ShapeDtypeStruct((g_pad, c_pad), jnp.float32),
        compiler_params=pltpu.CompilerParams(vmem_limit_bytes=_VMEM_LIMIT),
    )(t_roots_bf, x_roots_bf, w_lin_bf, b_lin, w_ct_bf, w_cs_bf, b_cls)


def _gather_roots(arr, news_index, g_pad, num_graphs):
    roots = jnp.take(arr, news_index, axis=0)     # a handful of row gathers
    return jnp.zeros((g_pad, arr.shape[1]), arr.dtype).at[:num_graphs].set(roots)


def tsnn_forward(x_pad_bf, a01_bf, mask_i8, dinv, kbeg, knum, kt_max, news_index,
                 w_gat_bf, a_src, a_dst, b_gat,
                 w1_bf, b1, w2_bf, b2,
                 w_lin_bf, b_lin, w_ct_bf, w_cs_bf, b_cls,
                 num_classes, num_graphs, g_pad):
    # leafconv1: GAT over leaf edges + relu.
    h_gat = gat_conv(x_pad_bf, w_gat_bf, a_dst, a_src, mask_i8, b_gat,
                     kbeg, knum, kt_max)
    # conv1 / conv2 (dropout = identity at inference).
    h1 = gcn_conv(a01_bf, h_gat, w1_bf, b1, dinv, kbeg, knum, kt_max)
    h2 = gcn_conv(a01_bf, h1, w2_bf, b2, dinv, kbeg, knum, kt_max)
    # Root (news) readout.
    t_roots = _gather_roots(h2, news_index, g_pad, num_graphs)
    x_roots = _gather_roots(x_pad_bf, news_index, g_pad, num_graphs)
    out_pad = head(t_roots, x_roots, w_lin_bf, b_lin, w_ct_bf, w_cs_bf, b_cls,
                   num_classes)
    return out_pad[:num_graphs, :num_classes]


# ----------------------------------------------------------------------------
# Plain-JAX/NumPy structural glue (graph densification, padding, tile ranges)
# ----------------------------------------------------------------------------
def pad2(a, rows, cols):
    a = np.asarray(a)
    out = np.zeros((rows, cols), np.float32)
    out[:a.shape[0], :a.shape[1]] = a
    return jnp.asarray(out)


def build_graph_glue(x, edge_index, batch, num_graphs, n_pad, f_pad):
    """One-time eager densification: 0/1 adjacency with self loops (duplicates
    counted, matching gcn_norm), D^-1/2, int8 leaf-edge mask, news indices and
    per-row-tile column-tile ranges (block-diagonal structure)."""
    x = np.asarray(x)
    src = np.asarray(edge_index[0])
    dst = np.asarray(edge_index[1])
    b = np.asarray(batch)
    n = x.shape[0]

    starts = np.array([np.nonzero(b == g)[0][0] for g in range(num_graphs)])
    ends = np.array([np.nonzero(b == g)[0][-1] + 1 for g in range(num_graphs)])
    news_index = starts.astype(np.int32)

    # A + I (message direction src -> dst); duplicate edges counted.
    a = np.zeros((n_pad, n_pad), np.float32)
    np.add.at(a, (dst, src), 1.0)
    a += np.eye(n_pad, dtype=np.float32)
    deg = a.sum(axis=1)
    dinv = (1.0 / np.sqrt(deg)).astype(np.float32)[:, None]

    # Leaf-edge GAT mask (int8): drop edges touching a news node, keep self loops.
    leaf = (~np.isin(src, news_index)) & (~np.isin(dst, news_index))
    mask = np.zeros((n_pad, n_pad), np.int8)
    mask[dst[leaf], src[leaf]] = 1
    np.fill_diagonal(mask, 1)

    # Per-row-tile column-tile [kbeg, kbeg+knum) ranges; always cover the
    # diagonal tile (self loops of padded rows live there).
    nrt = n_pad // TILE
    kbeg = np.zeros((nrt,), np.int32)
    knum = np.zeros((nrt,), np.int32)
    for i in range(nrt):
        r0, r1 = i * TILE, (i + 1) * TILE
        gs = [g for g in range(num_graphs) if starts[g] < r1 and ends[g] > r0]
        lo, hi = r0, r1
        if gs:
            lo = min(lo, int(starts[gs[0]]))
            hi = max(hi, int(ends[gs[-1]]))
        kb = lo // TILE
        ke = -(-hi // TILE)
        kbeg[i] = kb
        knum[i] = ke - kb
    kt_max = int(knum.max())

    x_pad = np.zeros((n_pad, f_pad), np.float32)
    x_pad[:n, :x.shape[1]] = x

    return (jnp.asarray(x_pad), jnp.asarray(a), jnp.asarray(mask),
            jnp.asarray(dinv), jnp.asarray(news_index),
            jnp.asarray(kbeg), jnp.asarray(knum), kt_max)


def reference_forward(x_pad, a01, mask_i8, dinv, news_index,
                      w_gat, a_src, a_dst, b_gat, w1, b1, w2, b2,
                      w_lin, b_lin, w_ct, w_cs, b_cls, num_classes):
    h = x_pad @ w_gat
    e = (h * a_dst).sum(-1, keepdims=True) + (h * a_src).sum(-1, keepdims=True).T
    e = jnp.where(e > 0, e, 0.2 * e)
    e = jnp.where(mask_i8 != 0, e, -jnp.inf)
    attn = jax.nn.softmax(e, axis=-1)
    h_gat = jnp.maximum(attn @ h + b_gat, 0.0)
    a_norm = dinv * a01 * dinv.T
    h1 = jnp.maximum(a_norm @ (h_gat @ w1) + b1, 0.0)
    h2 = jnp.maximum(a_norm @ (h1 @ w2) + b2, 0.0)
    t = h2[news_index]
    s = jnp.maximum(x_pad[news_index] @ w_lin + b_lin, 0.0)
    logits = (t @ w_ct + s @ w_cs + b_cls)[:, :num_classes]
    return logits - jax.scipy.special.logsumexp(logits, axis=-1, keepdims=True)


if __name__ == "__main__":
    # Toy TSNN config (args.num_features=16, nhid=32, num_classes=2).
    # Graph size (24) does not divide TILE, so some graphs straddle a row-tile
    # boundary: this exercises the block-diagonal clamp/skip path and the
    # fully-masked-tile branch of the online softmax.
    NUM_FEATURES = 16
    NHID = 32
    NUM_CLASSES = 2
    NODES_PER_GRAPH = 24
    NUM_GRAPHS = TILE // NODES_PER_GRAPH + 2
    N = NUM_GRAPHS * NODES_PER_GRAPH

    F_PAD = 128
    H1_PAD = 128          # 2*nhid lane-padded
    H2_PAD = 128          # nhid lane-padded
    C_PAD = 128
    N_PAD = 4 * TILE      # even row-tile count (balances v7x's 2 TCs)
    G_PAD = max(8, -(-NUM_GRAPHS // 8) * 8)
    assert N <= N_PAD

    key = jax.random.PRNGKey(0)
    keys = jax.random.split(key, 12)

    x = jax.random.normal(keys[0], (N, NUM_FEATURES), jnp.float32)
    batch = np.repeat(np.arange(NUM_GRAPHS, dtype=np.int32), NODES_PER_GRAPH)

    # Bidirectional star edges child <-> root plus a leaf-leaf chain so the
    # leaf GAT layer is non-trivial.
    src_list, dst_list = [], []
    for g in range(NUM_GRAPHS):
        off = g * NODES_PER_GRAPH
        for i in range(1, NODES_PER_GRAPH):
            src_list += [off + i, off]
            dst_list += [off, off + i]
        for i in range(1, NODES_PER_GRAPH - 1):
            src_list += [off + i, off + i + 1]
            dst_list += [off + i + 1, off + i]
    edge_index = np.array([src_list, dst_list], np.int32)

    def rnd(k, shape):
        return 0.1 * jax.random.normal(k, shape, jnp.float32)

    # Parameters (GATConv: weight, att_src, att_dst, bias; GCNConvs; lin; cls).
    w_gat = rnd(keys[1], (NUM_FEATURES, NUM_FEATURES))
    a_src = rnd(keys[2], (1, NUM_FEATURES))
    a_dst = rnd(keys[3], (1, NUM_FEATURES))
    b_gat = rnd(keys[4], (1, NUM_FEATURES))
    w1 = rnd(keys[5], (NUM_FEATURES, 2 * NHID))
    b1 = rnd(keys[6], (1, 2 * NHID))
    w2 = rnd(keys[7], (2 * NHID, NHID))
    b2 = rnd(keys[8], (1, NHID))
    w_lin = rnd(keys[9], (NUM_FEATURES, NHID))
    b_lin = rnd(keys[10], (1, NHID))
    w_cls = rnd(keys[11], (2 * NHID, NUM_CLASSES))
    b_cls = 0.1 * jnp.ones((1, NUM_CLASSES), jnp.float32)

    (x_pad, a01, mask_i8, dinv, news_index, kbeg, knum, kt_max) = \
        build_graph_glue(x, edge_index, batch, NUM_GRAPHS, N_PAD, F_PAD)

    # Padded (lane-dense) f32 parameters.
    w_gat_p = pad2(w_gat, F_PAD, F_PAD)
    a_src_p = pad2(a_src, 1, F_PAD)
    a_dst_p = pad2(a_dst, 1, F_PAD)
    b_gat_p = pad2(b_gat, 1, F_PAD)
    w1_p = pad2(w1, F_PAD, H1_PAD)
    b1_p = pad2(b1, 1, H1_PAD)
    w2_p = pad2(w2, H1_PAD, H2_PAD)
    b2_p = pad2(b2, 1, H2_PAD)
    w_lin_p = pad2(w_lin, F_PAD, H2_PAD)
    b_lin_p = pad2(b_lin, 1, H2_PAD)
    w_ct_p = pad2(w_cls[:NHID], H2_PAD, C_PAD)     # multiplies T
    w_cs_p = pad2(w_cls[NHID:], H2_PAD, C_PAD)     # multiplies S
    b_cls_p = pad2(b_cls, 1, C_PAD)

    # One-time bf16 casts of MXU operands (hoisted; never re-cast per layer).
    bf = lambda t: t.astype(jnp.bfloat16)
    x_pad_bf = bf(x_pad)
    a01_bf = bf(a01)          # exact: 0/1 (small-int) entries, dinv kept f32
    w_gat_bf, w1_bf, w2_bf = bf(w_gat_p), bf(w1_p), bf(w2_p)
    w_lin_bf, w_ct_bf, w_cs_bf = bf(w_lin_p), bf(w_ct_p), bf(w_cs_p)

    out = tsnn_forward(x_pad_bf, a01_bf, mask_i8, dinv, kbeg, knum, kt_max,
                       news_index,
                       w_gat_bf, a_src_p, a_dst_p, b_gat_p,
                       w1_bf, b1_p, w2_bf, b2_p,
                       w_lin_bf, b_lin_p, w_ct_bf, w_cs_bf, b_cls_p,
                       NUM_CLASSES, NUM_GRAPHS, G_PAD)
    out = jax.block_until_ready(out)

    ref = reference_forward(x_pad, a01, mask_i8, dinv, news_index,
                            w_gat_p, a_src_p, a_dst_p, b_gat_p,
                            w1_p, b1_p, w2_p, b2_p,
                            w_lin_p, b_lin_p, w_ct_p, w_cs_p, b_cls_p,
                            NUM_CLASSES)

    assert out.shape == (NUM_GRAPHS, NUM_CLASSES), out.shape
    assert bool(jnp.all(jnp.isfinite(out))), out
    # bf16 MXU operands (f32 accumulation) vs f32 reference -> loose tolerance.
    assert jnp.allclose(out, ref, atol=5e-2, rtol=5e-2), (out, ref)

    print("KERNEL_OK")
</pallas_src>

<mosaic_0001>
module attributes {stable_mosaic.version = 11 : i64} {
  func.func @gat_lin_kernel(%arg0: i32, %arg1: memref<128x128xbf16, #tpu.memory_space<vmem>>, %arg2: memref<128x128xbf16, #tpu.memory_space<vmem>>, %arg3: memref<1x128xf32, #tpu.memory_space<vmem>>, %arg4: memref<1x128xf32, #tpu.memory_space<vmem>>, %arg5: memref<128x128xbf16, #tpu.memory_space<vmem>>, %arg6: memref<128x1xf32, #tpu.memory_space<vmem>>, %arg7: memref<128x1xf32, #tpu.memory_space<vmem>>) attributes {dimension_semantics = [#tpu.dimension_semantics<parallel>], iteration_bounds = array<i64: 4>, scalar_prefetch = 0 : i64, scratch_operands = 0 : i64, tpu.core_type = #tpu.core_type<tc>, window_params = [{transform_indices = @transform_0, window_bounds = array<i64: 128, 128>}, {pipeline_mode = #tpu.pipeline_mode<synchronous>, transform_indices = @transform_1, window_bounds = array<i64: 128, 128>}, {pipeline_mode = #tpu.pipeline_mode<synchronous>, transform_indices = @transform_2, window_bounds = array<i64: 1, 128>}, {pipeline_mode = #tpu.pipeline_mode<synchronous>, transform_indices = @transform_3, window_bounds = array<i64: 1, 128>}, {transform_indices = @transform_4, window_bounds = array<i64: 128, 128>}, {transform_indices = @transform_5, window_bounds = array<i64: 128, 1>}, {transform_indices = @transform_6, window_bounds = array<i64: 128, 1>}]} {
    %c0 = arith.constant 0 : index
    %c0_0 = arith.constant 0 : index
    %0 = vector.load %arg1[%c0, %c0_0] : memref<128x128xbf16, #tpu.memory_space<vmem>>, vector<128x128xbf16>
    %c0_1 = arith.constant 0 : index
    %c0_2 = arith.constant 0 : index
    %1 = vector.load %arg2[%c0_1, %c0_2] : memref<128x128xbf16, #tpu.memory_space<vmem>>, vector<128x128xbf16>
    %cst = arith.constant dense<0.000000e+00> : vector<128x128xf32>
    %2 = tpu.matmul %0, %1, %cst {dimension_numbers = #tpu.dot_dimension_numbers<[1], [0], [0], [1], [0, 0, 1, 1], [], []>} : vector<128x128xbf16>, vector<128x128xbf16>, vector<128x128xf32> -> vector<128x128xf32>
    %3 = arith.truncf %2 : vector<128x128xf32> to vector<128x128xbf16>
    %c0_3 = arith.constant 0 : index
    %c0_4 = arith.constant 0 : index
    %4 = vector.load %arg5[%c0_3, %c0_4] : memref<128x128xbf16, #tpu.memory_space<vmem>>, vector<128x128xbf16>
    tpu.vector_store %arg5[%c0_3, %c0_4], %3 {strides = array<i32>} : memref<128x128xbf16, #tpu.memory_space<vmem>>, vector<128x128xbf16>,
    %c0_5 = arith.constant 0 : index
    %c0_6 = arith.constant 0 : index
    %5 = vector.load %arg3[%c0_5, %c0_6] : memref<1x128xf32, #tpu.memory_space<vmem>>, vector<1x128xf32>
    %6 = vector.broadcast %5 : vector<1x128xf32> to vector<128x128xf32>
    %7 = arith.mulf %2, %6 : vector<128x128xf32>
    %cst_7 = arith.constant dense<0.000000e+00> : vector<128xf32>
    %8 = vector.multi_reduction <add>, %7, %cst_7 [1] : vector<128x128xf32> to vector<128xf32>
    %9 = vector.shape_cast %8 : vector<128xf32> to vector<128x1xf32>
    %c0_8 = arith.constant 0 : index
    %c0_9 = arith.constant 0 : index
    %10 = vector.load %arg6[%c0_8, %c0_9] : memref<128x1xf32, #tpu.memory_space<vmem>>, vector<128x1xf32>
    tpu.vector_store %arg6[%c0_8, %c0_9], %9 {strides = array<i32>} : memref<128x1xf32, #tpu.memory_space<vmem>>, vector<128x1xf32>,
    %c0_10 = arith.constant 0 : index
    %c0_11 = arith.constant 0 : index
    %11 = vector.load %arg4[%c0_10, %c0_11] : memref<1x128xf32, #tpu.memory_space<vmem>>, vector<1x128xf32>
    %12 = vector.broadcast %11 : vector<1x128xf32> to vector<128x128xf32>
    %13 = arith.mulf %2, %12 : vector<128x128xf32>
    %cst_12 = arith.constant dense<0.000000e+00> : vector<128xf32>
    %14 = vector.multi_reduction <add>, %13, %cst_12 [1] : vector<128x128xf32> to vector<128xf32>
    %15 = vector.shape_cast %14 : vector<128xf32> to vector<128x1xf32>
    %c0_13 = arith.constant 0 : index
    %c0_14 = arith.constant 0 : index
    %16 = vector.load %arg7[%c0_13, %c0_14] : memref<128x1xf32, #tpu.memory_space<vmem>>, vector<128x1xf32>
    tpu.vector_store %arg7[%c0_13, %c0_14], %15 {strides = array<i32>} : memref<128x1xf32, #tpu.memory_space<vmem>>, vector<128x1xf32>,
    return
  }
  func.func @transform_0(%arg0: i32) -> (i32, i32) {
    %c0_i32 = arith.constant 0 : i32
    %c0_i32_0 = arith.constant 0 : i32
    return %arg0, %c0_i32 : i32, i32
  }
  func.func @transform_1(%arg0: i32) -> (i32, i32) {
    %c0_i32 = arith.constant 0 : i32
    %c0_i32_0 = arith.constant 0 : i32
    %c0_i32_1 = arith.constant 0 : i32
    return %c0_i32, %c0_i32_0 : i32, i32
  }
  func.func @transform_2(%arg0: i32) -> (i32, i32) {
    %c0_i32 = arith.constant 0 : i32
    %c0_i32_0 = arith.constant 0 : i32
    %c0_i32_1 = arith.constant 0 : i32
    return %c0_i32, %c0_i32_0 : i32, i32
  }
  func.func @transform_3(%arg0: i32) -> (i32, i32) {
    %c0_i32 = arith.constant 0 : i32
    %c0_i32_0 = arith.constant 0 : i32
    %c0_i32_1 = arith.constant 0 : i32
    return %c0_i32, %c0_i32_0 : i32, i32
  }
  func.func @transform_4(%arg0: i32) -> (i32, i32) {
    %c0_i32 = arith.constant 0 : i32
    %c0_i32_0 = arith.constant 0 : i32
    return %arg0, %c0_i32 : i32, i32
  }
  func.func @transform_5(%arg0: i32) -> (i32, i32) {
    %c0_i32 = arith.constant 0 : i32
    %c0_i32_0 = arith.constant 0 : i32
    return %arg0, %c0_i32 : i32, i32
  }
  func.func @transform_6(%arg0: i32) -> (i32, i32) {
    %c0_i32 = arith.constant 0 : i32
    %c0_i32_0 = arith.constant 0 : i32
    return %arg0, %c0_i32 : i32, i32
  }
}

</mosaic_0001>

<bundles_post_ra>
// kernel: tpu_custom_call.1
= control target key start
LH: loop header
LB: loop body
LE: loop exit
PB: predicated region body
PF: predicated region fallthrough
CT: control target
= control target key end

     0   :  { %12 = vsyncpa [#allocation3], 0  ;;  %s1705_s0 = inlined_call_operand.hbm [shape: bf16[512,128], index: 0, kind: input, shape index: {}]   ;;  %s1706_s1 = inlined_call_operand.hbm [shape: bf16[128,128], index: 1, kind: input, shape index: {}]   ;;  %s1707_s2 = inlined_call_operand.vmem [shape: f32[1,128], index: 2, kind: input, shape index: {}]   ;;  %s1708_s3 = inlined_call_operand.vmem [shape: f32[1,128], index: 3, kind: input, shape index: {}]   ;;  %s1709_s4 = inlined_call_operand.hbm [shape: bf16[512,128], index: 4, kind: output, shape index: {0}]   ;;  %s1710_s5 = inlined_call_operand.vmem [shape: f32[512,1], index: 5, kind: output, shape index: {1}]   ;;  %s1711_s6 = inlined_call_operand.vmem [shape: f32[512,1], index: 6, kind: output, shape index: {2}]  }
   0x1   :  { %14 = vsyncpa [#allocation3 + $0x1], 0 }
   0x2   :  { %15 = vsyncpa [#allocation6], 0 }
   0x3   :  { %16 = vsyncpa [#allocation4], 0 }
   0x4   :  { %18 = vsyncpa [#allocation4 + $0x1], 0  ;;  %s1360_s21 = smov 0   ;;  %s1362_s22 = smov 0  }
   0x5   :  { %s1364_s23 = smov 0   ;;  %s1366_s24 = smov 0  }
   0x6 LB: > { %s1381_s25 = sadd.s32 4294967295, %s1316_s24   ;;  %s928_s26 = sadd.s32 4294967294, %s1316_s24   ;;  %s1316_s24 = sphi %s1366_s24, %s1730_s24   ;;  %s1312_s23 = sphi %s1364_s23, %s1729_s23   ;;  %s1308_s22 = sphi %s1362_s22, %s1728_s22   ;;  %s1304_s21 = sphi %s1360_s21, %s1727_s21  }
   0x7   : > { %p44_p0 = scmp.ne.s32.totalorder %s1308_s22, %s1304_s21  ;;  %p1712_p1 = scmp.eq.s32.totalorder %s1381_s25, 0 }
   0x8   : > { %p137_p3 = scmp.eq.s32.totalorder %s928_s26, 3  ;;  %p929_p5 = scmp.ge.s32.totalorder %s1316_s24, 1 }
   0x9   : > { %p1390_p4 = por %p1712_p1, %p44_p0  ;;  %p196_p7 = scmp.lt.s32.totalorder %s1316_s24, 5 }
   0xa   : > { %p1395_p6 = por %p137_p3, %p44_p0  ;;  %s1318_s30 = smov [#allocation5]  }
   0xb   : > { %s1715_s27 = scalar_select %p1390_p4, 1, 0 }
   0xc   : > { %s1716_s28 = scalar_select %p1395_p6, 1, 0 }
   0xd   : > { %p1400_p8 = pnand %p929_p5, %p196_p7  ;;  %s208_s7 = sshll.u32 %s1318_s30, 4  ;;  %s209_s7 = int_to_ptr.vmem [resolvable:$true] %s208_s7 }
   0xe   : > { %s1413_s9 = sadd.s32 1, %s1316_s24   ;;  %s31_s10 = sadd.s32 1, %s1312_s23 }
   0xf   : > { %s1717_s29 = scalar_select %p1400_p8, 1, 0 }
  0x10   : > { %p1119_p9 = pneg %p1400_p8  ;;  %s28_s11 = ssub.s32 %s1316_s24, %s1413_s9 }
  0x11   : > { %s1188_s14 = scalar_lea.hbm %s1706_s1, 1024 }
  0x12   : > { %p1408_p10 = pnand %p1119_p9, %p1712_p1  ;;  %p1189_p11 = scmp.ne.s32.totalorder %s1706_s1, %s1188_s14 }
  0x13   : > { %p1195_p3 = scmp.lt.u32.totalorder %s1188_s14, %s1706_s1 }
  0x14   : > { %p1190_p12 = pneg %p1408_p10 }
  0x16   : > { %p1191_p13 = pnand %p1190_p12, %p1189_p11 }
  0x18   : > { %p1192_p0 = pneg %p1191_p13 }
  0x1a   : > { %p1197_p5 = pnand %p1195_p3, %p1192_p0 }
  0x1c   : > { %1200 = shalt.err (!%p1197_p5)
}
  0x1d   : > { %s1201_s19 = scalar_lea.vmem %s209_s7, 1024  ;;  %p1209_p2 = scmp.lt.s32.totalorder %s209_s7, %s209_s7 }
  0x1e   : > { %p1202_p7 = scmp.ne.s32.totalorder %s209_s7, %s1201_s19  ;;  %p1210_p6 = scmp.lt.s32.totalorder %s1201_s19, %s1201_s19 }
  0x20   : > { %p1204_p9 = pnand %p1202_p7, %p1190_p12  ;;  %p1211_p4 = por %p1210_p6, %p1209_p2 }
  0x22   : > { %p1205_p1 = pneg %p1204_p9 }
  0x24   : > { %p1212_p8 = pnand %p1211_p4, %p1205_p1 }
  0x26   : > { %1215 = shalt.err (!%p1212_p8)
}
  0x27   : > { %s1319_s20 = smov 64   ;;  %s1320_s26 = smov 4  }
  0x28   : > { %1122 = dma.hbm_to_vmem [thread:$0]  (!%p1408_p10), %s1706_s1, 1024, %s209_s7, [#allocation6], %s1319_s20, %s1319_s20, %s1320_s26  }
  0x29   : > { %p29_p1 = scmp.eq.s32.totalorder %s28_s11, 0  ;;  %p38_p2 = scmp.ne.s32.totalorder %s1312_s23, %s1308_s22 }
  0x2a   : > { %p39_p4 = scmp.eq.s32.totalorder %s1316_s24, 0  ;;  %p1132_p6 = scmp.lt.s32.totalorder %s1316_s24, 4 }
  0x2b   : > { %s1442_s13 = scalar_select %p29_p1, %s1312_s23, %s31_s10  }
  0x2c   : > { %p40_p8 = por %p39_p4, %p38_p2  ;;  %p1719_p11 = scmp.eq.s32.totalorder %s1381_s25, 3 }
  0x2d   : > { %s228_s8 = sand.u32 1, %s1312_s23   ;;  %s982_s15 = sshll.u32 %s1316_s24, 10 }
  0x2e   : > { %p1446_p12 = por %p1719_p11, %p38_p2  ;;  %s932_s16 = sshll.u32 %s228_s8, 6 }
  0x2f   : > { %s1455_s19 = scalar_lea.hbm %s1705_s0, %s982_s15  ;;  %s232_s7 = scalar_lea.vmem [#allocation2], %s932_s16 }
  0x30   : > { %s239_s10 = sshll.u32 %s232_s7, 4  ;;  %p1457_p10 = pnand %p1132_p6, %p40_p8  ;;  %s1461_s10 = int_to_ptr.vmem [resolvable:$true] %s239_s10 }
  0x31   : > { %s1463_s30 = scalar_lea.sflag [#allocation3], %s228_s8  ;;  %s1216_s12 = scalar_lea.hbm %s1455_s19, 1024 }
  0x32   : > { %p1217_p13 = scmp.ne.s32.totalorder %s1455_s19, %s1216_s12  ;;  %p1218_p0 = pneg %p1457_p10 }
  0x33   : > { %s1221_s17 = scalar_lea.hbm %s1705_s0, 4096  ;;  %p1222_p7 = scmp.lt.u32.totalorder %s1455_s19, %s1705_s0 }
  0x34   : > { %p1219_p3 = pnand %p1218_p0, %p1217_p13  ;;  %p1223_p9 = scmp.lt.u32.totalorder %s1221_s17, %s1216_s12 }
  0x35   : > { %p1225_p2 = scmp.lt.u32.totalorder %s1216_s12, %s1455_s19 }
  0x36   : > { %p1220_p5 = pneg %p1219_p3  ;;  %p1224_p1 = por %p1223_p9, %p1222_p7 }
  0x38   : > { %p1226_p4 = por %p1225_p2, %p1224_p1 }
  0x3a   : > { %p1227_p6 = pnand %p1226_p4, %p1220_p5 }
  0x3c   : > { %1230 = shalt.err (!%p1227_p6)
}
  0x3d   : > { %s1231_s8 = scalar_lea.vmem %s1461_s10, 1024  ;;  %s1321_s15 = smov [#allocation2]  }
  0x3e   : > { %p1232_p8 = scmp.ne.s32.totalorder %s1461_s10, %s1231_s8  ;;  %s1236_s16 = sshll.u32 %s1321_s15, 4  ;;  %s1237_s16 = int_to_ptr.vmem [resolvable:$false] %s1236_s16 }
  0x3f   : > { %s1238_s18 = scalar_lea.vmem %s1237_s16, 2048  ;;  %p1239_p3 = scmp.lt.s32.totalorder %s1461_s10, %s1237_s16 }
  0x40   : > { %p1234_p11 = pnand %p1232_p8, %p1218_p0  ;;  %p1240_p7 = scmp.lt.s32.totalorder %s1238_s18, %s1231_s8 }
  0x42   : > { %p1235_p13 = pneg %p1234_p11  ;;  %p1241_p9 = por %p1240_p7, %p1239_p3 }
  0x44   : > { %p1242_p1 = pnand %p1241_p9, %p1235_p13 }
  0x46   : > { %1245 = shalt.err (!%p1242_p1)
}
  0x47   : > { %1126 = dma.hbm_to_vmem [thread:$0]  (!%p1457_p10), %s1455_s19, 1024, %s1461_s10, %s1463_s30, %s1319_s20, %s1319_s20, %s1320_s26  }
  0x48   : > { %p1722_p0 = scmp.ne.s32.totalorder %s1717_s29, 0 }
  0x49   : > { %s1497_s12 = sand.u32 (!%p1722_p0), 1, %s1308_s22   ;;  %p1723_p5 = scmp.ne.s32.totalorder (!%p1722_p0), %s1715_s27, 0 }
  0x4a   : > { %251 = sbr.rel (%p1722_p0) target bundleno = 535 (0x217), region = 36  ;;  %s936_s17 = sshll.u32 (!%p1722_p0), %s1497_s12, 6 }
  0x4b   : > { %s254_s7 = scalar_lea.sflag (!%p1722_p0), [#allocation3], %s1497_s12  ;;  %s1503_s11 = scalar_lea.vmem (!%p1722_p0), [#allocation2], %s936_s17 }
  0x51   : > { %1291 = dma.done.wait (%p1723_p5), %s254_s7, 1024  }
  0x52   : > { %1293 = vsyncadd (%p1723_p5), %s254_s7, 4294966272  ;;  %p1724_p10 = scmp.eq.s32.totalorder %s1381_s25, 0 }
  0x54   : > { %1295 = dma.done.wait (%p1724_p10), [#allocation6], 1024   ;;  %p1725_p2 = pmov %p1724_p10 }
  0x55   : > { %v1172_v0 = vld [vmem:[#allocation5] sm:$0xff]   ;;  %v1173_v1 = vld [vmem:[#allocation5 + $0x8] sm:$0xff]   ;;  %v1174_v2 = vld [vmem:[#allocation5 + $0x10] sm:$0xff]   ;;  %s1535_s19 = scalar_lea.vmem [#allocation7], %s936_s17  ;;  %s999_s30 = sshll.u32 %s1381_s25, 10 }
  0x56   : > { %1297 = vsyncadd (%p1725_p2), [#allocation6], 4294966272  ;;  %1063 = vmatprep.subr.bf16.mxu0 %v1172_v0  ;;  %1095 = vmatprep.subr.bf16.mxu1 %v1172_v0  ;;  %v1175_v3 = vld [vmem:[#allocation5 + $0x18] sm:$0xff]   ;;  %v1180_v4 = vld [vmem:[%s1503_s11] sm:$0xff]   ;;  %s787_s10 = sshll.u32 %s1535_s19, 4  ;;  %s1585_s16 = scalar_lea.hbm %s1709_s4, %s999_s30  ;;  %s1587_s10 = int_to_ptr.vmem [resolvable:$true] %s787_s10 }
  0x57   : > { %1064 = vmatpush3.bf16.msra.mxu0 %v1172_v0  ;;  %1103 = vmatpush3.bf16.msra.mxu1 %v1172_v0  ;;  %v1181_v5 = vld [vmem:[%s1503_s11 + $0x20] sm:$0xff]   ;;  %v1177_v7 = vld [vmem:[#allocation5 + $0x28] sm:$0xff]   ;;  %v1178_v8 = vld [vmem:[#allocation5 + $0x30] sm:$0xff]   ;;  %s764_s18 = scalar_lea.sflag [#allocation4], %s1497_s12  ;;  %s1246_s17 = scalar_lea.vmem %s1587_s10, 1024 }
  0x58   : > { %1065 = vmatprep.subr.bf16.mxu0 %v1173_v1  ;;  %1096 = vmatprep.subr.bf16.mxu1 %v1173_v1  ;;  %v1176_v6 = vld [vmem:[#allocation5 + $0x20] sm:$0xff]   ;;  %v1179_v9 = vld [vmem:[#allocation5 + $0x38] sm:$0xff]   ;;  %v1182_v10 = vld [vmem:[%s1503_s11 + $0x8] sm:$0xff]   ;;  %p1247_p4 = scmp.ne.s32.totalorder %s1587_s10, %s1246_s17  ;;  %s1322_s7 = smov [#allocation7]  }
  0x59   : > { %1079 = vmatprep.mubr.bf16.mxu0 %v1180_v4  ;;  %1087 = vmatprep.mubr.bf16.mxu1 %v1181_v5  ;;  %v1183_v11 = vld [vmem:[%s1503_s11 + $0x28] sm:$0xff]   ;;  %v1184_v12 = vld [vmem:[%s1503_s11 + $0x10] sm:$0xff]   ;;  %v1185_v14 = vld [vmem:[%s1503_s11 + $0x18] sm:$0xff]  }
  0x5a   : > { %v1186_v13 = vld [vmem:[%s1503_s11 + $0x30] sm:$0xff]   ;;  %v1187_v15 = vld [vmem:[%s1503_s11 + $0x38] sm:$0xff]   ;;  %v1524_v16 = vld [vmem:[%s1707_s2] ss:$0 sm:$0xff]  ;;  %p1248_p6 = pnand %p1247_p4, %p1446_p12  ;;  %s1250_s11 = sshll.u32 %s1322_s7, 4  ;;  %s1251_s11 = int_to_ptr.vmem [resolvable:$false] %s1250_s11 }
  0x5b   : > { %1066 = vmatpush3.bf16.msra.mxu0 %v1173_v1  ;;  %1104 = vmatpush3.bf16.msra.mxu1 %v1173_v1  ;;  %v1531_v25 = vld [vmem:[%s1708_s3] ss:$0 sm:$0xff]  ;;  %s1252_s27 = scalar_lea.vmem %s1251_s11, 2048  ;;  %p1253_p11 = scmp.lt.s32.totalorder %s1587_s10, %s1251_s11 }
  0x5c   : > { %1067 = vmatprep.subr.bf16.mxu0 %v1174_v2  ;;  %1097 = vmatprep.subr.bf16.mxu1 %v1174_v2  ;;  %p1249_p8 = pneg %p1248_p6  ;;  %p1254_p13 = scmp.lt.s32.totalorder %s1252_s27, %s1246_s17 }
  0x5e   : > { %p1255_p3 = por %p1254_p13, %p1253_p11 }
  0x5f   : > { %1068 = vmatpush3.bf16.msra.mxu0 %v1174_v2  ;;  %1105 = vmatpush3.bf16.msra.mxu1 %v1174_v2 }
  0x60   : > { %1069 = vmatprep.subr.bf16.mxu0 %v1175_v3  ;;  %1098 = vmatprep.subr.bf16.mxu1 %v1175_v3  ;;  %p1256_p7 = pnand %p1255_p3, %p1249_p8 }
  0x63   : > { %1070 = vmatpush3.bf16.msra.mxu0 %v1175_v3  ;;  %1106 = vmatpush3.bf16.msra.mxu1 %v1175_v3 }
  0x64   : > { %1071 = vmatprep.subr.bf16.mxu0 %v1176_v6  ;;  %1099 = vmatprep.subr.bf16.mxu1 %v1176_v6 }
  0x67   : > { %1072 = vmatpush3.bf16.msra.mxu0 %v1176_v6  ;;  %1107 = vmatpush3.bf16.msra.mxu1 %v1176_v6 }
  0x68   : > { %1073 = vmatprep.subr.bf16.mxu0 %v1177_v7  ;;  %1100 = vmatprep.subr.bf16.mxu1 %v1177_v7 }
  0x6b   : > { %1074 = vmatpush3.bf16.msra.mxu0 %v1177_v7  ;;  %1108 = vmatpush3.bf16.msra.mxu1 %v1177_v7 }
  0x6c   : > { %1075 = vmatprep.subr.bf16.mxu0 %v1178_v8  ;;  %1101 = vmatprep.subr.bf16.mxu1 %v1178_v8 }
  0x6f   : > { %1076 = vmatpush3.bf16.msra.mxu0 %v1178_v8  ;;  %1109 = vmatpush3.bf16.msra.mxu1 %v1178_v8 }
  0x70   : > { %1077 = vmatprep.subr.bf16.mxu0 %v1179_v9  ;;  %1102 = vmatprep.subr.bf16.mxu1 %v1179_v9 }
  0x73   : > { %1078 = vmatpush3.bf16.msra.mxu0 %v1179_v9  ;;  %1110 = vmatpush3.bf16.msra.mxu1 %v1179_v9 }
  0x76   : > { %1080 = vmatmul.mubr.bf16.vlgmr.msra.gmra.mrb[0].mxu0 %v1182_v10  ;;  %1088 = vmatmul.mubr.bf16.vlgmr.msra.gmra.mrb[0].mxu1 %v1183_v11 }
  0x77   : > { %1083 = vmatprep.mubr.bf16.mxu0 %v1184_v12  ;;  %1091 = vmatprep.mubr.bf16.mxu1 %v1186_v13 }
  0x7e   : > { %1084 = vmatmul.mubr.bf16.gmra.mrb[4].mxu0 %v1185_v14  ;;  %1092 = vmatmul.mubr.bf16.gmra.mrb[4].mxu1 %v1187_v15 }
 0x149   : > { %v1081_v17 = vpop.f32.mrb[0].mxu0  ;;  %v1089_v18 = vpop.f32.mrb[0].mxu1 }
 0x14a   : > { %v477_v19 = vpop.f32.mrb[1].mxu0  ;;  %v509_v20 = vpop.f32.mrb[1].mxu1  ;;  %v637_v21 = vmul.f32 %v1089_v18, %v1524_v16  ;;  %v629_v22 = vmul.f32 %v1081_v17, %v1524_v16  ;;  %v701_v32 = vmul.f32 %v1081_v17, %v1531_v25  ;;  %v709_v36 = vmul.f32 %v1089_v18, %v1531_v25 }
 0x14b   : > { %v1082_v23 = vpop.f32.mrb[2].mxu0  ;;  %v1090_v24 = vpop.f32.mrb[2].mxu1  ;;  %v627_v48 = vmul.f32 %v1524_v16, %v477_v19  ;;  %v635_v50 = vmul.f32 %v1524_v16, %v509_v20  ;;  %v699_v52 = vmul.f32 %v1531_v25, %v477_v19  ;;  %v707_v54 = vmul.f32 %v1531_v25, %v509_v20 }
 0x14c   : > { %v1008_v26 = vpack.c.bf16 %v1082_v23, %v1081_v17  ;;  %v1028_v27 = vpack.c.bf16 %v1090_v24, %v1089_v18  ;;  %663 = vadd.xlane.f32.xlu0 %v637_v21  ;;  %v512_v28 = vpop.f32.mrb[3].mxu1  ;;  %647 = vadd.xlane.f32.xlu1 %v629_v22  ;;  %v480_v29 = vpop.f32.mrb[3].mxu0  ;;  %v630_v33 = vmul.f32 %v1082_v23, %v1524_v16 }
 0x14d   : > { %v1023_v30 = vpack.c.bf16 %v512_v28, %v509_v20  ;;  %v1003_v31 = vpack.c.bf16 %v480_v29, %v477_v19  ;;  %v638_v37 = vmul.f32 %v1090_v24, %v1524_v16  ;;  %v702_v49 = vmul.f32 %v1082_v23, %v1531_v25 }
 0x14e   : > { %1040 = vst [vmem:[%s1535_s19 + $0x8] sm:$0xff] %v1008_v26   ;;  %1044 = vst [vmem:[%s1535_s19 + $0x28] sm:$0xff] %v1028_v27   ;;  %v710_v51 = vmul.f32 %v1090_v24, %v1531_v25  ;;  %v636_v53 = vmul.f32 %v1524_v16, %v512_v28  ;;  %v700_v55 = vmul.f32 %v1531_v25, %v480_v29 }
 0x14f   : > { %1043 = vst [vmem:[%s1535_s19 + $0x20] sm:$0xff] %v1023_v30   ;;  %1004 = vst [vmem:[%s1535_s19] sm:$0xff] %v1003_v31   ;;  %v708_v56 = vmul.f32 %v1531_v25, %v512_v28  ;;  %v628_v57 = vmul.f32 %v1524_v16, %v480_v29 }
 0x150   : > { %719 = vadd.xlane.f32.xlu0 %v701_v32  ;;  %649 = vadd.xlane.f32.xlu1 %v630_v33 }
 0x151   : > { %v1085_v34 = vpop.f32.mrb[4].mxu0  ;;  %v1543_v35 = vpop.f32.mrb[4].mxu1 }
 0x152   : > { %v493_v38 = vpop.f32.mrb[5].mxu0  ;;  %v525_v39 = vpop.f32.mrb[5].mxu1  ;;  %v633_v58 = vmul.f32 %v1085_v34, %v1524_v16  ;;  %v641_v60 = vmul.f32 %v1543_v35, %v1524_v16  ;;  %v705_v62 = vmul.f32 %v1085_v34, %v1531_v25  ;;  %v713_v8 = vmul.f32 %v1543_v35, %v1531_v25 }
 0x153   : > { %v1086_v40 = vpop.f32.mrb[6].mxu0  ;;  %v1094_v41 = vpop.f32.mrb[6].mxu1  ;;  %v631_v0 = vmul.f32 %v1524_v16, %v493_v38  ;;  %v639_v2 = vmul.f32 %v1524_v16, %v525_v39  ;;  %v703_v4 = vmul.f32 %v1531_v25, %v493_v38  ;;  %v711_v6 = vmul.f32 %v1531_v25, %v525_v39 }
 0x154   : > { %735 = vadd.xlane.f32.xlu0 %v709_v36  ;;  %665 = vadd.xlane.f32.xlu1 %v638_v37  ;;  %v1018_v42 = vpack.c.bf16 %v1086_v40, %v1085_v34  ;;  %v496_v43 = vpop.f32.mrb[7].mxu0  ;;  %v1038_v44 = vpack.c.bf16 %v1094_v41, %v1543_v35  ;;  %v528_v45 = vpop.f32.mrb[7].mxu1  ;;  %v634_v59 = vmul.f32 %v1086_v40, %v1524_v16 }
 0x155   : > { %v1013_v46 = vpack.c.bf16 %v496_v43, %v493_v38  ;;  %v1033_v47 = vpack.c.bf16 %v528_v45, %v525_v39  ;;  %v642_v61 = vmul.f32 %v1094_v41, %v1524_v16  ;;  %v706_v63 = vmul.f32 %v1086_v40, %v1531_v25 }
 0x156   : > { %1042 = vst [vmem:[%s1535_s19 + $0x18] sm:$0xff] %v1018_v42   ;;  %1046 = vst [vmem:[%s1535_s19 + $0x38] sm:$0xff] %v1038_v44   ;;  %v632_v1 = vmul.f32 %v1524_v16, %v496_v43  ;;  %v640_v3 = vmul.f32 %v1524_v16, %v528_v45  ;;  %v704_v5 = vmul.f32 %v1531_v25, %v496_v43 }
 0x157   : > { %1041 = vst [vmem:[%s1535_s19 + $0x10] sm:$0xff] %v1013_v46   ;;  %1045 = vst [vmem:[%s1535_s19 + $0x30] sm:$0xff] %v1033_v47   ;;  %v712_v7 = vmul.f32 %v1531_v25, %v528_v45  ;;  %v714_v9 = vmul.f32 %v1094_v41, %v1531_v25 }
 0x158   : > { %643 = vadd.xlane.f32.xlu0 %v627_v48  ;;  %721 = vadd.xlane.f32.xlu1 %v702_v49 }
 0x15c   : > { %659 = vadd.xlane.f32.xlu0 %v635_v50  ;;  %737 = vadd.xlane.f32.xlu1 %v710_v51 }
 0x160   : > { %715 = vadd.xlane.f32.xlu0 %v699_v52  ;;  %661 = vadd.xlane.f32.xlu1 %v636_v53 }
 0x164   : > { %731 = vadd.xlane.f32.xlu0 %v707_v54  ;;  %717 = vadd.xlane.f32.xlu1 %v700_v55 }
 0x168   : > { %733 = vadd.xlane.f32.xlu1 %v708_v56  ;;  %645 = vadd.xlane.f32.xlu0 %v628_v57 }
 0x16c   : > { %655 = vadd.xlane.f32.xlu0 %v633_v58  ;;  %657 = vadd.xlane.f32.xlu1 %v634_v59 }
 0x170   : > { %671 = vadd.xlane.f32.xlu0 %v641_v60  ;;  %673 = vadd.xlane.f32.xlu1 %v642_v61 }
 0x174   : > { %727 = vadd.xlane.f32.xlu0 %v705_v62  ;;  %729 = vadd.xlane.f32.xlu1 %v706_v63 }
 0x178   : > { %651 = vadd.xlane.f32.xlu0 %v631_v0  ;;  %653 = vadd.xlane.f32.xlu1 %v632_v1 }
 0x17c   : > { %667 = vadd.xlane.f32.xlu0 %v639_v2  ;;  %669 = vadd.xlane.f32.xlu1 %v640_v3 }
 0x180   : > { %723 = vadd.xlane.f32.xlu0 %v703_v4  ;;  %725 = vadd.xlane.f32.xlu1 %v704_v5 }
 0x184   : > { %739 = vadd.xlane.f32.xlu0 %v711_v6  ;;  %741 = vadd.xlane.f32.xlu1 %v712_v7 }
 0x188   : > { %743 = vadd.xlane.f32.xlu0 %v713_v8  ;;  %745 = vadd.xlane.f32.xlu1 %v714_v9 }
 0x189   : > { %1259 = shalt.err (!%p1256_p7)
}
 0x18a   : > { %s1260_s29 = scalar_lea.hbm %s1585_s16, 1024  ;;  %s1264_s19 = scalar_lea.hbm %s1709_s4, 4096 }
 0x18b   : > { %p1261_p9 = scmp.ne.s32.totalorder %s1585_s16, %s1260_s29  ;;  %p1265_p5 = scmp.lt.u32.totalorder %s1585_s16, %s1709_s4 }
 0x18c   : > { %p1266_p10 = scmp.lt.u32.totalorder %s1264_s19, %s1260_s29  ;;  %p1268_p4 = scmp.lt.u32.totalorder %s1260_s29, %s1585_s16 }
 0x18d   : > { %p1262_p1 = pnand %p1261_p9, %p1446_p12 }
 0x18e   : > { %p1267_p2 = por %p1266_p10, %p1265_p5 }
 0x18f   : > { %p1263_p0 = pneg %p1262_p1 }
 0x190   : > { %p1269_p6 = por %p1268_p4, %p1267_p2 }
 0x192   : > { %p1270_p8 = pnand %p1269_p6, %p1263_p0 }
 0x194   : > { %1273 = shalt.err (!%p1270_p8)
}
 0x195   : > { %s1323_s15 = smov 64   ;;  %s1324_s17 = smov 4   ;;  %vm675_vm0 = vcmask 7168  }
 0x196   : > { %1117 = dma.vmem_to_hbm [thread:$0]  (%p1446_p12), %s1587_s10, 1024, %s1585_s16, %s764_s18, %s1323_s15, %s1323_s15, %s1324_s17  }
 0x197   : > { %s939_s7 = sshll.u32 %s1381_s25, 4 }
 0x198   : > { %p303_p11 = scmp.lt.s32.totalorder %s939_s7, 63 }
 0x19a   : > { %s1732_s7 = smov (!%p303_p11, %s939_s7), 63 }
 0x19b   : > { %s940_s11 = sshll.u32 %s1732_s7, 3 }
 0x19c   : > { %s1617_s29 = scalar_lea.vmem %s1710_s5, %s940_s11  ;;  %s1626_s12 = scalar_lea.vmem %s1711_s6, %s940_s11 }
 0x1d9   : > { %v664_v10 = vpop.xlane.xlu0 %663  ;;  %v648_v11 = vpop.xlane.xlu1 %647 }
 0x1da   : > { %686 = vst.msk [vmem:[%s1617_s29 + $0x50] sm:$0xff] %vm675_vm0, %v664_v10  ;;  %678 = vst.msk [vmem:[%s1617_s29 + $0x10] sm:$0xff] %vm675_vm0, %v648_v11 }
 0x1dd   : > { %v720_v12 = vpop.xlane.xlu0 %719  ;;  %v650_v13 = vpop.xlane.xlu1 %649 }
 0x1de   : > { %749 = vst.msk [vmem:[%s1626_s12 + $0x10] sm:$0xff] %vm675_vm0, %v720_v12  ;;  %679 = vst.msk [vmem:[%s1617_s29 + $0x18] sm:$0xff] %vm675_vm0, %v650_v13 }
 0x1e1   : > { %v736_v14 = vpop.xlane.xlu0 %735  ;;  %v666_v15 = vpop.xlane.xlu1 %665 }
 0x1e2   : > { %757 = vst.msk [vmem:[%s1626_s12 + $0x50] sm:$0xff] %vm675_vm0, %v736_v14  ;;  %687 = vst.msk [vmem:[%s1617_s29 + $0x58] sm:$0xff] %vm675_vm0, %v666_v15 }
 0x1e5   : > { %v644_v16 = vpop.xlane.xlu0 %643  ;;  %v722_v17 = vpop.xlane.xlu1 %721 }
 0x1e6   : > { %676 = vst.msk [vmem:[%s1617_s29] sm:$0xff] %vm675_vm0, %v644_v16  ;;  %750 = vst.msk [vmem:[%s1626_s12 + $0x18] sm:$0xff] %vm675_vm0, %v722_v17 }
 0x1e9   : > { %v660_v18 = vpop.xlane.xlu0 %659  ;;  %v738_v19 = vpop.xlane.xlu1 %737 }
 0x1ea   : > { %684 = vst.msk [vmem:[%s1617_s29 + $0x40] sm:$0xff] %vm675_vm0, %v660_v18  ;;  %758 = vst.msk [vmem:[%s1626_s12 + $0x58] sm:$0xff] %vm675_vm0, %v738_v19 }
 0x1ed   : > { %v716_v20 = vpop.xlane.xlu0 %715  ;;  %v662_v21 = vpop.xlane.xlu1 %661 }
 0x1ee   : > { %747 = vst.msk [vmem:[%s1626_s12] sm:$0xff] %vm675_vm0, %v716_v20  ;;  %685 = vst.msk [vmem:[%s1617_s29 + $0x48] sm:$0xff] %vm675_vm0, %v662_v21 }
 0x1f1   : > { %v732_v22 = vpop.xlane.xlu0 %731  ;;  %v718_v23 = vpop.xlane.xlu1 %717 }
 0x1f2   : > { %755 = vst.msk [vmem:[%s1626_s12 + $0x40] sm:$0xff] %vm675_vm0, %v732_v22  ;;  %748 = vst.msk [vmem:[%s1626_s12 + $0x8] sm:$0xff] %vm675_vm0, %v718_v23 }
 0x1f5   : > { %v734_v24 = vpop.xlane.xlu1 %733  ;;  %v646_v25 = vpop.xlane.xlu0 %645 }
 0x1f6   : > { %756 = vst.msk [vmem:[%s1626_s12 + $0x48] sm:$0xff] %vm675_vm0, %v734_v24  ;;  %677 = vst.msk [vmem:[%s1617_s29 + $0x8] sm:$0xff] %vm675_vm0, %v646_v25 }
 0x1f9   : > { %v656_v26 = vpop.xlane.xlu0 %655  ;;  %v658_v27 = vpop.xlane.xlu1 %657 }
 0x1fa   : > { %682 = vst.msk [vmem:[%s1617_s29 + $0x30] sm:$0xff] %vm675_vm0, %v656_v26  ;;  %683 = vst.msk [vmem:[%s1617_s29 + $0x38] sm:$0xff] %vm675_vm0, %v658_v27 }
 0x1fd   : > { %v672_v28 = vpop.xlane.xlu0 %671  ;;  %v674_v29 = vpop.xlane.xlu1 %673 }
 0x1fe   : > { %690 = vst.msk [vmem:[%s1617_s29 + $0x70] sm:$0xff] %vm675_vm0, %v672_v28  ;;  %691 = vst.msk [vmem:[%s1617_s29 + $0x78] sm:$0xff] %vm675_vm0, %v674_v29 }
 0x201   : > { %v728_v30 = vpop.xlane.xlu0 %727  ;;  %v730_v31 = vpop.xlane.xlu1 %729 }
 0x202   : > { %753 = vst.msk [vmem:[%s1626_s12 + $0x30] sm:$0xff] %vm675_vm0, %v728_v30  ;;  %754 = vst.msk [vmem:[%s1626_s12 + $0x38] sm:$0xff] %vm675_vm0, %v730_v31 }
 0x205   : > { %v652_v32 = vpop.xlane.xlu0 %651  ;;  %v654_v33 = vpop.xlane.xlu1 %653 }
 0x206   : > { %680 = vst.msk [vmem:[%s1617_s29 + $0x20] sm:$0xff] %vm675_vm0, %v652_v32  ;;  %681 = vst.msk [vmem:[%s1617_s29 + $0x28] sm:$0xff] %vm675_vm0, %v654_v33 }
 0x209   : > { %v668_v34 = vpop.xlane.xlu0 %667  ;;  %v670_v35 = vpop.xlane.xlu1 %669 }
 0x20a   : > { %688 = vst.msk [vmem:[%s1617_s29 + $0x60] sm:$0xff] %vm675_vm0, %v668_v34  ;;  %689 = vst.msk [vmem:[%s1617_s29 + $0x68] sm:$0xff] %vm675_vm0, %v670_v35 }
 0x20d   : > { %v724_v36 = vpop.xlane.xlu0 %723  ;;  %v726_v37 = vpop.xlane.xlu1 %725 }
 0x20e   : > { %751 = vst.msk [vmem:[%s1626_s12 + $0x20] sm:$0xff] %vm675_vm0, %v724_v36  ;;  %752 = vst.msk [vmem:[%s1626_s12 + $0x28] sm:$0xff] %vm675_vm0, %v726_v37 }
 0x211   : > { %v740_v38 = vpop.xlane.xlu0 %739  ;;  %v742_v39 = vpop.xlane.xlu1 %741 }
 0x212   : > { %759 = vst.msk [vmem:[%s1626_s12 + $0x60] sm:$0xff] %vm675_vm0, %v740_v38  ;;  %760 = vst.msk [vmem:[%s1626_s12 + $0x68] sm:$0xff] %vm675_vm0, %v742_v39 }
 0x215   : > { %v744_v40 = vpop.xlane.xlu0 %743  ;;  %v746_v41 = vpop.xlane.xlu1 %745 }
 0x216   : > { %761 = vst.msk [vmem:[%s1626_s12 + $0x70] sm:$0xff] %vm675_vm0, %v744_v40  ;;  %762 = vst.msk [vmem:[%s1626_s12 + $0x78] sm:$0xff] %vm675_vm0, %v746_v41 }
 0x217 PF: > { %p1134_p12 = scmp.ge.s32.totalorder %s1316_s24, 2  ;;  %s810_s10 = sand.u32 1, %s1304_s21  }
 0x218   : > { %p1726_p13 = scmp.ne.s32.totalorder %s1716_s28, 0  ;;  %s811_s16 = scalar_lea.sflag [#allocation4], %s810_s10 }
 0x21a   : > { %p1128_p3 = pnand %p1134_p12, %p1726_p13 }
 0x21c   : > { %1299 = dma.done.wait (!%p1128_p3), %s811_s16, 1024  }
 0x21d   : > { %1301 = vsyncadd (!%p1128_p3), %s811_s16, 4294966272  ;;  %p21_p7 = scmp.ge.s32.totalorder %s1413_s9, 6   ;;  %s1727_s21 = smov %s1308_s22 }
 0x21e   : > { %s1728_s22 = smov %s1312_s23  ;;  %s1729_s23 = smov %s1442_s13 }
 0x21f   : > { %s1730_s24 = smov %s1413_s9  ;;  %23 = sbr.rel (!%p21_p7) target bundleno = 6 (0x6), region = 109 }
 0x226   :  { %832 = vsyncpa [#allocation3], 1 }
 0x227   :  { %834 = vsyncpa [#allocation3 + $0x1], 1 }
 0x228   :  { %835 = vsyncpa [#allocation6], 1 }
 0x229   :  { %836 = vsyncpa [#allocation4], 1 }
 0x22a   :  { %838 = vsyncpa [#allocation4 + $0x1], 1 }

</bundles_post_ra>
